<compile_context>
chip_gen: v7x
topology: tpu7x:2x2x1
jax: 0.10.0
libtpu: 0.0.40
codegen_flags: <defaults>
</compile_context>

<pallas_src>
import functools

import jax
import jax.numpy as jnp
from jax.experimental import pallas as pl
from jax.experimental.pallas import tpu as pltpu

# --- "module init" constants (deterministic, synthetic) ----------------------
DICE_SMOOTH = 0.0          # DiceLoss(smooth=0.0)
DICE_EPS = 1e-7            # DiceLoss(eps=1e-7)
CE_SMOOTH_FACTOR = 0.1     # SoftCrossEntropyLoss(smooth_factor=0.1)
DICE_LOSS_WEIGHT = 1.0
CE_LOSS_WEIGHT = 1.0

# Per-class statistics emitted per batch element (lane index in the output):
#   0: sum_pix prob[c] * onehot[c]     (dice intersection)
#   1: sum_pix prob[c]                 (dice predicted mass)
#   2: sum_pix onehot[c]               (dice ground-truth count)
#   3: sum_pix -log p[c] * onehot[c]   (CE target NLL)
#   4: sum_pix -log p[c]               (CE label-smoothing term)
_NUM_STATS = 5


def dice_ce_stats_kernel(logits_ref, target_ref, stats_ref,
                         inter_acc, psum_acc, gt_acc, nll_acc, sm_acc,
                         *, hw, has_tail):
    j = pl.program_id(1)
    nj = pl.num_programs(1)
    num_classes, tile = logits_ref.shape

    @pl.when(j == 0)
    def _init():
        for acc in (inter_acc, psum_acc, gt_acc, nll_acc, sm_acc):
            acc[...] = jnp.zeros_like(acc)

    def step(masked):
        x = logits_ref[...].astype(jnp.float32)                 # (C, T)
        t = target_ref[...]                                     # (1, T) int32
        if masked:
            lane = jax.lax.broadcasted_iota(jnp.int32, (1, tile), 1)
            valid = (j * tile + lane) < hw                      # (1, T) bool
            x = jnp.where(valid, x, 0.0)                        # keep padding finite

        # Softmax statistics over the class (sublane) axis.  exp(z) is reused
        # for probs and log-sum-exp; the divide is a (1, T) reciprocal.
        m = jnp.max(x, axis=0, keepdims=True)
        z = x - m
        ez = jnp.exp(z)
        denom = jnp.sum(ez, axis=0, keepdims=True)
        inv = pl.reciprocal(denom, approx=False)                # exact; (1, T) only
        lse = jnp.log(denom)
        prob = ez * inv                                         # softmax probs
        nlp = lse - z                                           # -log p[c]

        cls = jax.lax.broadcasted_iota(jnp.int32, (num_classes, tile), 0)
        onehot = cls == t                                       # predicate, no float one-hot
        if masked:
            onehot = jnp.logical_and(onehot, valid)
            prob_v = jnp.where(valid, prob, 0.0)
            nlp_v = jnp.where(valid, nlp, 0.0)
        else:
            prob_v = prob
            nlp_v = nlp

        # Per-step lane reductions (XLU) -> tiny (C, 1) accumulator RMWs,
        # instead of full (C, tile) accumulator writebacks every step.
        inter_acc[...] += jnp.sum(jnp.where(onehot, prob, 0.0), axis=1, keepdims=True)
        psum_acc[...] += jnp.sum(prob_v, axis=1, keepdims=True)
        gt_acc[...] += jnp.sum(jnp.where(onehot, 1.0, 0.0), axis=1, keepdims=True)
        nll_acc[...] += jnp.sum(jnp.where(onehot, nlp, 0.0), axis=1, keepdims=True)
        sm_acc[...] += jnp.sum(nlp_v, axis=1, keepdims=True)

    if has_tail:
        # Mask-free fast path for full tiles; masked path only on the last tile.
        @pl.when(j < nj - 1)
        def _full_tiles():
            step(masked=False)

        @pl.when(j == nj - 1)
        def _tail_tile():
            step(masked=True)
    else:
        step(masked=False)

    @pl.when(j == nj - 1)
    def _flush():
        # Per-batch stats block; the scalar dice+CE combine happens in XLA.
        stats_ref[:, 0:1] = inter_acc[...]
        stats_ref[:, 1:2] = psum_acc[...]
        stats_ref[:, 2:3] = gt_acc[...]
        stats_ref[:, 3:4] = nll_acc[...]
        stats_ref[:, 4:5] = sm_acc[...]


def _vmem_capacity_bytes():
    try:
        return int(pltpu.get_tpu_info().vmem_capacity_bytes)
    except Exception:
        return 64 << 20  # conservative: v7x per-TensorCore VMEM


def dice_ce_loss(output_nchw, target_nhw, *, tile=None,
                 dice_weight=DICE_LOSS_WEIGHT, ce_weight=CE_LOSS_WEIGHT,
                 smooth=DICE_SMOOTH, eps=DICE_EPS,
                 smooth_factor=CE_SMOOTH_FACTOR):
    n, c, h, w = output_nchw.shape
    hw = h * w
    itemsize = jnp.dtype(output_nchw.dtype).itemsize

    # --- budget-driven lane tile -------------------------------------------
    cap = _vmem_capacity_bytes()
    budget = min(cap // 2, 24 << 20)          # generation-safe working budget
    # Per-lane VMEM bytes: double-buffered logits + double-buffered (sublane-
    # padded) target + ~8 f32 (C, tile) compiler temporaries for the softmax /
    # select chain (accumulators are now O(C*128), negligible).
    per_lane = 2 * c * itemsize + 2 * 8 * 4 + 8 * c * 4

    hw_pad = ((hw + 127) // 128) * 128
    if tile is None:
        tile = budget // per_lane
    tile = int(max(128, min(int(tile), 32768)))
    tile = (tile // 128) * 128
    tile = min(tile, hw_pad)
    n_tiles = pl.cdiv(hw, tile)
    has_tail = (hw % tile) != 0

    need = tile * per_lane
    # Only raise the scoped-VMEM limit when the tile actually needs it, and
    # never above half of physical VMEM (v7x has only 64 MiB per core).
    vmem_limit = None if need <= (12 << 20) else int(min(cap // 2, 32 << 20))

    # NCHW -> (N, C, H*W): a free reshape (no transpose, no extra HBM pass).
    # Logits stay in their native dtype; upcast to f32 inside the kernel.
    logits = output_nchw.reshape(n, c, hw)
    target = target_nhw.reshape(n, 1, hw).astype(jnp.int32)

    kernel = functools.partial(dice_ce_stats_kernel, hw=hw, has_tail=has_tail)

    # TODO(synk): for N == 1 on v7x, also split the pixel-tile axis across the
    # two TensorCores (extra leading "parallel" axis with per-core partials).
    stats = pl.pallas_call(
        kernel,
        out_shape=jax.ShapeDtypeStruct((n, c, _NUM_STATS), jnp.float32),
        grid_spec=pltpu.PrefetchScalarGridSpec(
            num_scalar_prefetch=0,
            grid=(n, n_tiles),
            in_specs=[
                pl.BlockSpec((None, c, tile), lambda b, j: (b, 0, j)),
                pl.BlockSpec((None, 1, tile), lambda b, j: (b, 0, j)),
            ],
            out_specs=pl.BlockSpec((None, c, _NUM_STATS), lambda b, j: (b, 0, 0)),
            scratch_shapes=[pltpu.VMEM((c, 1), jnp.float32)] * 5,
        ),
        compiler_params=pltpu.CompilerParams(
            dimension_semantics=("parallel", "arbitrary"),
            vmem_limit_bytes=vmem_limit),
    )(logits, target)

    # --- ~20-flop finalize in XLA on the (N, C, 5) partial statistics --------
    stats = jnp.sum(stats, axis=0)                         # (C, 5) over batch
    inter = stats[:, 0]
    gt = stats[:, 2]
    card = stats[:, 1] + gt                                # sum(prob + onehot)
    nll_sum = jnp.sum(stats[:, 3])
    sm_sum = jnp.sum(stats[:, 4])

    dice = (2.0 * inter + smooth) / jnp.maximum(card + smooth, eps)
    dice_loss = jnp.mean((1.0 - dice) * (gt > 0).astype(jnp.float32))

    inv_npix = 1.0 / float(n * hw)
    ce_loss = ((1.0 - smooth_factor) * nll_sum * inv_npix
               + (smooth_factor / c) * sm_sum * inv_npix)

    return dice_weight * dice_loss + ce_weight * ce_loss


def reference_dice_ce_loss(output, target):
    """Pure-JAX reference matching smp DiceLoss(multiclass) + SoftCrossEntropyLoss."""
    n, c, h, w = output.shape
    lp = jax.nn.log_softmax(output.astype(jnp.float32), axis=1)
    prob = jnp.exp(lp)
    onehot = jax.nn.one_hot(target, c, axis=1, dtype=jnp.float32)  # (N,C,H,W)

    dims = (0, 2, 3)
    inter = jnp.sum(prob * onehot, axis=dims)
    card = jnp.sum(prob + onehot, axis=dims)
    gt = jnp.sum(onehot, axis=dims)
    dice = (2.0 * inter + DICE_SMOOTH) / jnp.maximum(card + DICE_SMOOTH, DICE_EPS)
    dice_loss = jnp.mean((1.0 - dice) * (gt > 0).astype(jnp.float32))

    nll = -jnp.take_along_axis(lp, target[:, None, :, :], axis=1)[:, 0]
    smooth_term = -jnp.sum(lp, axis=1)
    ce_loss = ((1.0 - CE_SMOOTH_FACTOR) * jnp.mean(nll)
               + (CE_SMOOTH_FACTOR / c) * jnp.mean(smooth_term))

    return DICE_LOSS_WEIGHT * dice_loss + CE_LOSS_WEIGHT * ce_loss


if __name__ == "__main__":
    key = jax.random.PRNGKey(0)
    k_out, k_tgt, k_out2, k_tgt2 = jax.random.split(key, 4)

    # Case 1: even tiling (mask-free fast path).
    N, C, H, W = 2, 4, 16, 16
    output = jax.random.normal(k_out, (N, C, H, W), dtype=jnp.float32)
    target = jax.random.randint(k_tgt, (N, H, W), 0, C, dtype=jnp.int32)
    loss = jax.block_until_ready(dice_ce_loss(output, target))
    ref = jax.block_until_ready(reference_dice_ce_loss(output, target))
    assert jnp.allclose(loss, ref, rtol=1e-5, atol=1e-5), (loss, ref)

    # Case 2: ragged last tile (masked tail path), tile forced below H*W.
    H2, W2 = 16, 24   # hw = 384, tile = 256 -> partial final tile
    output2 = jax.random.normal(k_out2, (N, C, H2, W2), dtype=jnp.float32)
    target2 = jax.random.randint(k_tgt2, (N, H2, W2), 0, C, dtype=jnp.int32)
    loss2 = jax.block_until_ready(dice_ce_loss(output2, target2, tile=256))
    ref2 = jax.block_until_ready(reference_dice_ce_loss(output2, target2))
    assert jnp.allclose(loss2, ref2, rtol=1e-5, atol=1e-5), (loss2, ref2)

    print("KERNEL_OK")
</pallas_src>

<mosaic_0001>
module attributes {stable_mosaic.version = 11 : i64} {
  func.func @dice_ce_stats_kernel(%arg0: i32, %arg1: i32, %arg2: memref<1x4x256xf32, #tpu.memory_space<vmem>>, %arg3: memref<1x1x256xi32, #tpu.memory_space<vmem>>, %arg4: memref<1x4x5xf32, #tpu.memory_space<vmem>>, %arg5: memref<4x1xf32, #tpu.memory_space<vmem>>, %arg6: memref<4x1xf32, #tpu.memory_space<vmem>>, %arg7: memref<4x1xf32, #tpu.memory_space<vmem>>, %arg8: memref<4x1xf32, #tpu.memory_space<vmem>>, %arg9: memref<4x1xf32, #tpu.memory_space<vmem>>) attributes {dimension_semantics = [#tpu.dimension_semantics<parallel>, #tpu.dimension_semantics<arbitrary>], iteration_bounds = array<i64: 2, 1>, scalar_prefetch = 0 : i64, scratch_operands = 5 : i64, tpu.core_type = #tpu.core_type<tc>, window_params = [{transform_indices = @transform_0, window_bounds = array<i64: 1, 4, 256>}, {transform_indices = @transform_1, window_bounds = array<i64: 1, 1, 256>}, {transform_indices = @transform_2, window_bounds = array<i64: 1, 4, 5>}]} {
    %c0_i32 = arith.constant 0 : i32
    %0 = arith.cmpi eq, %arg1, %c0_i32 : i32
    %1 = arith.extui %0 : i1 to i32
    %c0_i32_0 = arith.constant 0 : i32
    %2 = arith.cmpi ne, %1, %c0_i32_0 : i32
    scf.if %2 {
      %cst_38 = arith.constant 0.000000e+00 : f32
      %58 = vector.broadcast %cst_38 : f32 to vector<4x1xf32>
      %c0_39 = arith.constant 0 : index
      %c0_40 = arith.constant 0 : index
      %59 = vector.load %arg5[%c0_39, %c0_40] : memref<4x1xf32, #tpu.memory_space<vmem>>, vector<4x1xf32>
      tpu.vector_store %arg5[%c0_39, %c0_40], %58 {strides = array<i32>} : memref<4x1xf32, #tpu.memory_space<vmem>>, vector<4x1xf32>,
      %cst_41 = arith.constant 0.000000e+00 : f32
      %60 = vector.broadcast %cst_41 : f32 to vector<4x1xf32>
      %c0_42 = arith.constant 0 : index
      %c0_43 = arith.constant 0 : index
      %61 = vector.load %arg6[%c0_42, %c0_43] : memref<4x1xf32, #tpu.memory_space<vmem>>, vector<4x1xf32>
      tpu.vector_store %arg6[%c0_42, %c0_43], %60 {strides = array<i32>} : memref<4x1xf32, #tpu.memory_space<vmem>>, vector<4x1xf32>,
      %cst_44 = arith.constant 0.000000e+00 : f32
      %62 = vector.broadcast %cst_44 : f32 to vector<4x1xf32>
      %c0_45 = arith.constant 0 : index
      %c0_46 = arith.constant 0 : index
      %63 = vector.load %arg7[%c0_45, %c0_46] : memref<4x1xf32, #tpu.memory_space<vmem>>, vector<4x1xf32>
      tpu.vector_store %arg7[%c0_45, %c0_46], %62 {strides = array<i32>} : memref<4x1xf32, #tpu.memory_space<vmem>>, vector<4x1xf32>,
      %cst_47 = arith.constant 0.000000e+00 : f32
      %64 = vector.broadcast %cst_47 : f32 to vector<4x1xf32>
      %c0_48 = arith.constant 0 : index
      %c0_49 = arith.constant 0 : index
      %65 = vector.load %arg8[%c0_48, %c0_49] : memref<4x1xf32, #tpu.memory_space<vmem>>, vector<4x1xf32>
      tpu.vector_store %arg8[%c0_48, %c0_49], %64 {strides = array<i32>} : memref<4x1xf32, #tpu.memory_space<vmem>>, vector<4x1xf32>,
      %cst_50 = arith.constant 0.000000e+00 : f32
      %66 = vector.broadcast %cst_50 : f32 to vector<4x1xf32>
      %c0_51 = arith.constant 0 : index
      %c0_52 = arith.constant 0 : index
      %67 = vector.load %arg9[%c0_51, %c0_52] : memref<4x1xf32, #tpu.memory_space<vmem>>, vector<4x1xf32>
      tpu.vector_store %arg9[%c0_51, %c0_52], %66 {strides = array<i32>} : memref<4x1xf32, #tpu.memory_space<vmem>>, vector<4x1xf32>,
    } else {
    }
    %c0 = arith.constant 0 : index
    %c0_1 = arith.constant 0 : index
    %c0_2 = arith.constant 0 : index
    %3 = vector.load %arg2[%c0, %c0_1, %c0_2] : memref<1x4x256xf32, #tpu.memory_space<vmem>>, vector<1x4x256xf32>
    %4 = vector.shape_cast %3 : vector<1x4x256xf32> to vector<4x256xf32>
    %c0_3 = arith.constant 0 : index
    %c0_4 = arith.constant 0 : index
    %c0_5 = arith.constant 0 : index
    %5 = vector.load %arg3[%c0_3, %c0_4, %c0_5] : memref<1x1x256xi32, #tpu.memory_space<vmem>>, vector<1x1x256xi32>
    %6 = vector.shape_cast %5 : vector<1x1x256xi32> to vector<1x256xi32>
    %cst = arith.constant dense<0xFF800000> : vector<256xf32>
    %7 = vector.multi_reduction <maximumf>, %4, %cst [0] : vector<4x256xf32> to vector<256xf32>
    %8 = vector.shape_cast %7 : vector<256xf32> to vector<1x256xf32>
    %9 = vector.broadcast %8 : vector<1x256xf32> to vector<4x256xf32>
    %10 = arith.subf %4, %9 : vector<4x256xf32>
    %11 = math.exp %10 : vector<4x256xf32>
    %cst_6 = arith.constant dense<0.000000e+00> : vector<256xf32>
    %12 = vector.multi_reduction <add>, %11, %cst_6 [0] : vector<4x256xf32> to vector<256xf32>
    %13 = vector.shape_cast %12 : vector<256xf32> to vector<1x256xf32>
    %14 = tpu.reciprocal %13 : vector<1x256xf32> -> vector<1x256xf32>
    %15 = math.log %13 : vector<1x256xf32>
    %16 = vector.broadcast %14 : vector<1x256xf32> to vector<4x256xf32>
    %17 = arith.mulf %11, %16 : vector<4x256xf32>
    %18 = vector.broadcast %15 : vector<1x256xf32> to vector<4x256xf32>
    %19 = arith.subf %18, %10 : vector<4x256xf32>
    %20 = tpu.iota {dimensions = array<i32: 0>} : vector<4x256xi32>
    %21 = vector.broadcast %6 : vector<1x256xi32> to vector<4x256xi32>
    %22 = arith.cmpi eq, %20, %21 : vector<4x256xi32>
    %c0_7 = arith.constant 0 : index
    %c0_8 = arith.constant 0 : index
    %23 = vector.load %arg5[%c0_7, %c0_8] : memref<4x1xf32, #tpu.memory_space<vmem>>, vector<4x1xf32>
    %cst_9 = arith.constant 0.000000e+00 : f32
    %24 = vector.broadcast %cst_9 : f32 to vector<4x256xf32>
    %25 = arith.select %22, %17, %24 : vector<4x256xi1>, vector<4x256xf32>
    %cst_10 = arith.constant dense<0.000000e+00> : vector<4xf32>
    %26 = vector.multi_reduction <add>, %25, %cst_10 [1] : vector<4x256xf32> to vector<4xf32>
    %27 = vector.shape_cast %26 : vector<4xf32> to vector<4x1xf32>
    %28 = arith.addf %23, %27 : vector<4x1xf32>
    %c0_11 = arith.constant 0 : index
    %c0_12 = arith.constant 0 : index
    %29 = vector.load %arg5[%c0_11, %c0_12] : memref<4x1xf32, #tpu.memory_space<vmem>>, vector<4x1xf32>
    tpu.vector_store %arg5[%c0_11, %c0_12], %28 {strides = array<i32>} : memref<4x1xf32, #tpu.memory_space<vmem>>, vector<4x1xf32>,
    %c0_13 = arith.constant 0 : index
    %c0_14 = arith.constant 0 : index
    %30 = vector.load %arg6[%c0_13, %c0_14] : memref<4x1xf32, #tpu.memory_space<vmem>>, vector<4x1xf32>
    %cst_15 = arith.constant dense<0.000000e+00> : vector<4xf32>
    %31 = vector.multi_reduction <add>, %17, %cst_15 [1] : vector<4x256xf32> to vector<4xf32>
    %32 = vector.shape_cast %31 : vector<4xf32> to vector<4x1xf32>
    %33 = arith.addf %30, %32 : vector<4x1xf32>
    %c0_16 = arith.constant 0 : index
    %c0_17 = arith.constant 0 : index
    %34 = vector.load %arg6[%c0_16, %c0_17] : memref<4x1xf32, #tpu.memory_space<vmem>>, vector<4x1xf32>
    tpu.vector_store %arg6[%c0_16, %c0_17], %33 {strides = array<i32>} : memref<4x1xf32, #tpu.memory_space<vmem>>, vector<4x1xf32>,
    %c0_18 = arith.constant 0 : index
    %c0_19 = arith.constant 0 : index
    %35 = vector.load %arg7[%c0_18, %c0_19] : memref<4x1xf32, #tpu.memory_space<vmem>>, vector<4x1xf32>
    %cst_20 = arith.constant 1.000000e+00 : f32
    %cst_21 = arith.constant 0.000000e+00 : f32
    %36 = vector.broadcast %cst_20 : f32 to vector<4x256xf32>
    %37 = vector.broadcast %cst_21 : f32 to vector<4x256xf32>
    %38 = arith.select %22, %36, %37 : vector<4x256xi1>, vector<4x256xf32>
    %cst_22 = arith.constant dense<0.000000e+00> : vector<4xf32>
    %39 = vector.multi_reduction <add>, %38, %cst_22 [1] : vector<4x256xf32> to vector<4xf32>
    %40 = vector.shape_cast %39 : vector<4xf32> to vector<4x1xf32>
    %41 = arith.addf %35, %40 : vector<4x1xf32>
    %c0_23 = arith.constant 0 : index
    %c0_24 = arith.constant 0 : index
    %42 = vector.load %arg7[%c0_23, %c0_24] : memref<4x1xf32, #tpu.memory_space<vmem>>, vector<4x1xf32>
    tpu.vector_store %arg7[%c0_23, %c0_24], %41 {strides = array<i32>} : memref<4x1xf32, #tpu.memory_space<vmem>>, vector<4x1xf32>,
    %c0_25 = arith.constant 0 : index
    %c0_26 = arith.constant 0 : index
    %43 = vector.load %arg8[%c0_25, %c0_26] : memref<4x1xf32, #tpu.memory_space<vmem>>, vector<4x1xf32>
    %cst_27 = arith.constant 0.000000e+00 : f32
    %44 = vector.broadcast %cst_27 : f32 to vector<4x256xf32>
    %45 = arith.select %22, %19, %44 : vector<4x256xi1>, vector<4x256xf32>
    %cst_28 = arith.constant dense<0.000000e+00> : vector<4xf32>
    %46 = vector.multi_reduction <add>, %45, %cst_28 [1] : vector<4x256xf32> to vector<4xf32>
    %47 = vector.shape_cast %46 : vector<4xf32> to vector<4x1xf32>
    %48 = arith.addf %43, %47 : vector<4x1xf32>
    %c0_29 = arith.constant 0 : index
    %c0_30 = arith.constant 0 : index
    %49 = vector.load %arg8[%c0_29, %c0_30] : memref<4x1xf32, #tpu.memory_space<vmem>>, vector<4x1xf32>
    tpu.vector_store %arg8[%c0_29, %c0_30], %48 {strides = array<i32>} : memref<4x1xf32, #tpu.memory_space<vmem>>, vector<4x1xf32>,
    %c0_31 = arith.constant 0 : index
    %c0_32 = arith.constant 0 : index
    %50 = vector.load %arg9[%c0_31, %c0_32] : memref<4x1xf32, #tpu.memory_space<vmem>>, vector<4x1xf32>
    %cst_33 = arith.constant dense<0.000000e+00> : vector<4xf32>
    %51 = vector.multi_reduction <add>, %19, %cst_33 [1] : vector<4x256xf32> to vector<4xf32>
    %52 = vector.shape_cast %51 : vector<4xf32> to vector<4x1xf32>
    %53 = arith.addf %50, %52 : vector<4x1xf32>
    %c0_34 = arith.constant 0 : index
    %c0_35 = arith.constant 0 : index
    %54 = vector.load %arg9[%c0_34, %c0_35] : memref<4x1xf32, #tpu.memory_space<vmem>>, vector<4x1xf32>
    tpu.vector_store %arg9[%c0_34, %c0_35], %53 {strides = array<i32>} : memref<4x1xf32, #tpu.memory_space<vmem>>, vector<4x1xf32>,
    %c0_i32_36 = arith.constant 0 : i32
    %55 = arith.cmpi eq, %arg1, %c0_i32_36 : i32
    %56 = arith.extui %55 : i1 to i32
    %c0_i32_37 = arith.constant 0 : i32
    %57 = arith.cmpi ne, %56, %c0_i32_37 : i32
    scf.if %57 {
      %c0_38 = arith.constant 0 : index
      %c0_39 = arith.constant 0 : index
      %58 = vector.load %arg5[%c0_38, %c0_39] : memref<4x1xf32, #tpu.memory_space<vmem>>, vector<4x1xf32>
      %c0_40 = arith.constant 0 : index
      %c0_41 = arith.constant 0 : index
      %c0_42 = arith.constant 0 : index
      %59 = vector.load %arg4[%c0_40, %c0_41, %c0_42] : memref<1x4x5xf32, #tpu.memory_space<vmem>>, vector<1x4x1xf32>
      %60 = vector.shape_cast %59 : vector<1x4x1xf32> to vector<4x1xf32>
      %61 = vector.shape_cast %58 : vector<4x1xf32> to vector<1x4x1xf32>
      tpu.vector_store %arg4[%c0_40, %c0_41, %c0_42], %61 {strides = array<i32>} : memref<1x4x5xf32, #tpu.memory_space<vmem>>, vector<1x4x1xf32>,
      %c0_43 = arith.constant 0 : index
      %c0_44 = arith.constant 0 : index
      %62 = vector.load %arg6[%c0_43, %c0_44] : memref<4x1xf32, #tpu.memory_space<vmem>>, vector<4x1xf32>
      %c0_45 = arith.constant 0 : index
      %c0_46 = arith.constant 0 : index
      %c1 = arith.constant 1 : index
      %63 = vector.load %arg4[%c0_45, %c0_46, %c1] : memref<1x4x5xf32, #tpu.memory_space<vmem>>, vector<1x4x1xf32>
      %64 = vector.shape_cast %63 : vector<1x4x1xf32> to vector<4x1xf32>
      %65 = vector.shape_cast %62 : vector<4x1xf32> to vector<1x4x1xf32>
      tpu.vector_store %arg4[%c0_45, %c0_46, %c1], %65 {strides = array<i32>} : memref<1x4x5xf32, #tpu.memory_space<vmem>>, vector<1x4x1xf32>,
      %c0_47 = arith.constant 0 : index
      %c0_48 = arith.constant 0 : index
      %66 = vector.load %arg7[%c0_47, %c0_48] : memref<4x1xf32, #tpu.memory_space<vmem>>, vector<4x1xf32>
      %c0_49 = arith.constant 0 : index
      %c0_50 = arith.constant 0 : index
      %c2 = arith.constant 2 : index
      %67 = vector.load %arg4[%c0_49, %c0_50, %c2] : memref<1x4x5xf32, #tpu.memory_space<vmem>>, vector<1x4x1xf32>
      %68 = vector.shape_cast %67 : vector<1x4x1xf32> to vector<4x1xf32>
      %69 = vector.shape_cast %66 : vector<4x1xf32> to vector<1x4x1xf32>
      tpu.vector_store %arg4[%c0_49, %c0_50, %c2], %69 {strides = array<i32>} : memref<1x4x5xf32, #tpu.memory_space<vmem>>, vector<1x4x1xf32>,
      %c0_51 = arith.constant 0 : index
      %c0_52 = arith.constant 0 : index
      %70 = vector.load %arg8[%c0_51, %c0_52] : memref<4x1xf32, #tpu.memory_space<vmem>>, vector<4x1xf32>
      %c0_53 = arith.constant 0 : index
      %c0_54 = arith.constant 0 : index
      %c3 = arith.constant 3 : index
      %71 = vector.load %arg4[%c0_53, %c0_54, %c3] : memref<1x4x5xf32, #tpu.memory_space<vmem>>, vector<1x4x1xf32>
      %72 = vector.shape_cast %71 : vector<1x4x1xf32> to vector<4x1xf32>
      %73 = vector.shape_cast %70 : vector<4x1xf32> to vector<1x4x1xf32>
      tpu.vector_store %arg4[%c0_53, %c0_54, %c3], %73 {strides = array<i32>} : memref<1x4x5xf32, #tpu.memory_space<vmem>>, vector<1x4x1xf32>,
      %c0_55 = arith.constant 0 : index
      %c0_56 = arith.constant 0 : index
      %74 = vector.load %arg9[%c0_55, %c0_56] : memref<4x1xf32, #tpu.memory_space<vmem>>, vector<4x1xf32>
      %c0_57 = arith.constant 0 : index
      %c0_58 = arith.constant 0 : index
      %c4 = arith.constant 4 : index
      %75 = vector.load %arg4[%c0_57, %c0_58, %c4] : memref<1x4x5xf32, #tpu.memory_space<vmem>>, vector<1x4x1xf32>
      %76 = vector.shape_cast %75 : vector<1x4x1xf32> to vector<4x1xf32>
      %77 = vector.shape_cast %74 : vector<4x1xf32> to vector<1x4x1xf32>
      tpu.vector_store %arg4[%c0_57, %c0_58, %c4], %77 {strides = array<i32>} : memref<1x4x5xf32, #tpu.memory_space<vmem>>, vector<1x4x1xf32>,
    } else {
    }
    return
  }
  func.func @transform_0(%arg0: i32, %arg1: i32) -> (i32, i32, i32) {
    %c0_i32 = arith.constant 0 : i32
    %c0_i32_0 = arith.constant 0 : i32
    return %arg0, %c0_i32, %arg1 : i32, i32, i32
  }
  func.func @transform_1(%arg0: i32, %arg1: i32) -> (i32, i32, i32) {
    %c0_i32 = arith.constant 0 : i32
    %c0_i32_0 = arith.constant 0 : i32
    return %arg0, %c0_i32, %arg1 : i32, i32, i32
  }
  func.func @transform_2(%arg0: i32, %arg1: i32) -> (i32, i32, i32) {
    %c0_i32 = arith.constant 0 : i32
    %c0_i32_0 = arith.constant 0 : i32
    %c0_i32_1 = arith.constant 0 : i32
    return %arg0, %c0_i32, %c0_i32_0 : i32, i32, i32
  }
}

</mosaic_0001>

<bundles_post_ra>
// kernel: tpu_custom_call.1
= control target key start
LH: loop header
LB: loop body
LE: loop exit
PB: predicated region body
PF: predicated region fallthrough
CT: control target
= control target key end

     0   :  { %7 = vsyncpa [#allocation8], 0  ;;  %s1037_s0 = inlined_call_operand.hbm [shape: f32[2,4,256], index: 0, kind: input, shape index: {}]   ;;  %s1038_s1 = inlined_call_operand.hbm [shape: s32[2,1,256], index: 1, kind: input, shape index: {}]   ;;  %s1039_s2 = inlined_call_operand.hbm [shape: f32[2,4,5], index: 2, kind: output, shape index: {}]  }
   0x1   :  { %9 = vsyncpa [#allocation8 + $0x1], 0 }
   0x2   :  { %10 = vsyncpa [#allocation11], 0 }
   0x3   :  { %12 = vsyncpa [#allocation11 + $0x1], 0 }
   0x4   :  { %13 = vsyncpa [#allocation9], 0 }
   0x5   :  { %15 = vsyncpa [#allocation9 + $0x1], 0  ;;  %s780_s9 = smov 0   ;;  %s782_s10 = smov 0  }
   0x6   :  { %s784_s11 = smov 0   ;;  %s786_s12 = smov 0  }
   0x7   :  { %s788_s13 = smov 0   ;;  %s790_s14 = smov 0  }
   0x8 LB: > { %s506_s15 = sadd.s32 4294967295, %s755_s14   ;;  %s507_s16 = sadd.s32 4294967294, %s755_s14   ;;  %s755_s14 = sphi %s790_s14, %s21_s14   ;;  %s751_s13 = sphi %s788_s13, %s1059_s13   ;;  %s747_s12 = sphi %s786_s12, %s1058_s12   ;;  %s743_s11 = sphi %s784_s11, %s1057_s11   ;;  %s739_s10 = sphi %s782_s10, %s1056_s10   ;;  %s735_s9 = sphi %s780_s9, %s1055_s9  }
   0x9   : > { %s33_s17 = sadd.s32 1, %s751_s13  ;;  %s42_s18 = sadd.s32 1, %s743_s11 }
   0xa   : > { %p35_p0 = scmp.ge.s32.totalorder %s33_s17, 2  ;;  %p49_p1 = scmp.ne.s32.totalorder %s743_s11, %s739_s10 }
   0xb   : > { %p50_p2 = scmp.eq.s32.totalorder %s755_s14, 0  ;;  %p55_p3 = scmp.ne.s32.totalorder %s739_s10, %s735_s9 }
   0xc   : > { %s1061_s17 = smov (%p35_p0, %s33_s17), 0  ;;  %p56_p5 = scmp.eq.s32.totalorder %s506_s15, 0 }
   0xd   : > { %p821_p4 = por %p50_p2, %p49_p1  ;;  %s37_s20 = ssub.s32 %s751_s13, %s1061_s17 }
   0xe   : > { %p107_p6 = scmp.eq.s32.totalorder %s506_s15, 1  ;;  %p40_p7 = scmp.eq.s32.totalorder %s37_s20, 0 }
   0xf   : > { %p827_p8 = por %p56_p5, %p55_p3  ;;  %p113_p10 = scmp.eq.s32.totalorder %s507_s16, 1 }
  0x10   : > { %p831_p9 = por %p107_p6, %p49_p1  ;;  %p543_p13 = scmp.lt.s32.totalorder %s755_s14, 2 }
  0x11   : > { %s1043_s21 = scalar_select %p827_p8, 1, 0 }
  0x12   : > { %s1044_s22 = scalar_select %p831_p9, 1, 0 }
  0x13   : > { %s836_s23 = scalar_select %p40_p7, %s743_s11, %s42_s18  }
  0x14   : > { %p838_p11 = por %p113_p10, %p55_p3  ;;  %s845_s25 = sand.u32 1, %s743_s11  }
  0x15   : > { %s510_s26 = sshll.u32 %s845_s25, 3  ;;  %s524_s27 = sshll.u32 %s751_s13, 7 }
  0x16   : > { %s1045_s24 = scalar_select %p838_p11, 1, 0 }
  0x17   : > { %s852_s30 = scalar_lea.hbm %s1037_s0, %s524_s27  ;;  %s137_s3 = scalar_lea.vmem [#allocation7], %s510_s26 }
  0x18   : > { %s147_s4 = sshll.u32 %s137_s3, 4  ;;  %p858_p0 = pnand %p543_p13, %p821_p4  ;;  %s854_s4 = int_to_ptr.vmem [resolvable:$true] %s147_s4 }
  0x19   : > { %s134_s6 = scalar_lea.sflag [#allocation8], %s845_s25  ;;  %s609_s7 = scalar_lea.hbm %s852_s30, 128 }
  0x1a   : > { %p610_p3 = scmp.ne.s32.totalorder %s852_s30, %s609_s7  ;;  %p611_p5 = pneg %p858_p0 }
  0x1b   : > { %s614_s16 = scalar_lea.hbm %s1037_s0, 256  ;;  %p615_p4 = scmp.lt.u32.totalorder %s852_s30, %s1037_s0 }
  0x1c   : > { %p612_p6 = pnand %p611_p5, %p610_p3  ;;  %p616_p10 = scmp.lt.u32.totalorder %s614_s16, %s609_s7 }
  0x1d   : > { %p618_p12 = scmp.lt.u32.totalorder %s609_s7, %s852_s30 }
  0x1e   : > { %p613_p7 = pneg %p612_p6  ;;  %p617_p13 = por %p616_p10, %p615_p4 }
  0x20   : > { %p619_p1 = por %p618_p12, %p617_p13 }
  0x22   : > { %p620_p2 = pnand %p619_p1, %p613_p7 }
  0x24   : > { %623 = shalt.err (!%p620_p2)
}
  0x25   : > { %s624_s20 = scalar_lea.vmem %s854_s4, 128  ;;  %s757_s26 = smov [#allocation7]  }
  0x26   : > { %p625_p3 = scmp.ne.s32.totalorder %s854_s4, %s624_s20  ;;  %s629_s27 = sshll.u32 %s757_s26, 4  ;;  %s630_s27 = int_to_ptr.vmem [resolvable:$false] %s629_s27 }
  0x27   : > { %s631_s28 = scalar_lea.vmem %s630_s27, 256  ;;  %p632_p9 = scmp.lt.s32.totalorder %s854_s4, %s630_s27 }
  0x28   : > { %p627_p6 = pnand %p625_p3, %p611_p5  ;;  %p633_p4 = scmp.lt.s32.totalorder %s631_s28, %s624_s20 }
  0x2a   : > { %p628_p11 = pneg %p627_p6  ;;  %p634_p10 = por %p633_p4, %p632_p9 }
  0x2c   : > { %p635_p12 = pnand %p634_p10, %p628_p11 }
  0x2e   : > { %638 = shalt.err (!%p635_p12)
}
  0x2f   : > { %535 = dma.hbm_to_vmem [thread:$0]  (!%p858_p0), %s852_s30, 128, %s854_s4, %s134_s6  }
  0x30   : > { %p1047_p1 = scmp.lt.s32.totalorder %s755_s14, 3  ;;  %p1048_p2 = scmp.ge.s32.totalorder %s755_s14, 1 }
  0x31   : > { %s513_s3 = sshll.u32 %s845_s25, 1  ;;  %s525_s7 = sshll.u32 %s751_s13, 5 }
  0x32   : > { %p894_p7 = pnand %p1048_p2, %p1047_p1  ;;  %s903_s16 = scalar_lea.hbm %s1038_s1, %s525_s7 }
  0x33   : > { %s158_s18 = scalar_lea.vmem [#allocation10], %s513_s3  ;;  %s155_s30 = scalar_lea.sflag [#allocation11], %s845_s25 }
  0x34   : > { %s1049_s29 = scalar_select %p894_p7, 1, 0 }
  0x35   : > { %s168_s19 = sshll.u32 %s158_s18, 4  ;;  %s639_s4 = scalar_lea.hbm %s903_s16, 32  ;;  %s169_s19 = int_to_ptr.vmem [resolvable:$true] %s168_s19 }
  0x36   : > { %p640_p9 = scmp.ne.s32.totalorder %s903_s16, %s639_s4  ;;  %s644_s26 = scalar_lea.hbm %s1038_s1, 64 }
  0x37   : > { %p645_p3 = scmp.lt.u32.totalorder %s903_s16, %s1038_s1  ;;  %p646_p6 = scmp.lt.u32.totalorder %s644_s26, %s639_s4 }
  0x38   : > { %p642_p11 = pnand %p640_p9, %p611_p5  ;;  %p648_p10 = scmp.lt.u32.totalorder %s639_s4, %s903_s16 }
  0x39   : > { %p647_p4 = por %p646_p6, %p645_p3 }
  0x3a   : > { %p643_p13 = pneg %p642_p11 }
  0x3b   : > { %p649_p12 = por %p648_p10, %p647_p4 }
  0x3d   : > { %p650_p1 = pnand %p649_p12, %p643_p13 }
  0x3f   : > { %653 = shalt.err (!%p650_p1)
}
  0x40   : > { %s654_s25 = scalar_lea.vmem %s169_s19, 32  ;;  %s758_s3 = smov [#allocation10]  }
  0x41   : > { %p655_p2 = scmp.ne.s32.totalorder %s169_s19, %s654_s25  ;;  %s659_s7 = sshll.u32 %s758_s3, 4  ;;  %s660_s7 = int_to_ptr.vmem [resolvable:$false] %s659_s7 }
  0x42   : > { %s661_s8 = scalar_lea.vmem %s660_s7, 64  ;;  %p662_p8 = scmp.lt.s32.totalorder %s169_s19, %s660_s7 }
  0x43   : > { %p657_p9 = pnand %p655_p2, %p611_p5  ;;  %p663_p7 = scmp.lt.s32.totalorder %s661_s8, %s654_s25 }
  0x45   : > { %p658_p11 = pneg %p657_p9  ;;  %p664_p3 = por %p663_p7, %p662_p8 }
  0x47   : > { %p665_p6 = pnand %p664_p3, %p658_p11 }
  0x49   : > { %668 = shalt.err (!%p665_p6)
}
  0x4a   : > { %538 = dma.hbm_to_vmem [thread:$0]  (!%p858_p0), %s903_s16, 32, %s169_s19, %s155_s30  }
  0x4b   : > { %p1050_p13 = scmp.ne.s32.totalorder %s1049_s29, 0 }
  0x4c   : > { %s928_s15 = sand.u32 (!%p1050_p13), 1, %s739_s10   ;;  %p1051_p5 = scmp.ne.s32.totalorder (!%p1050_p13), %s1043_s21, 0 }
  0x4d   : > { %177 = sbr.rel (%p1050_p13) target bundleno = 444 (0x1bc), region = 28  ;;  %s517_s18 = sshll.u32 (!%p1050_p13), %s928_s15, 3 }
  0x4e   : > { %s180_s4 = scalar_lea.sflag (!%p1050_p13), [#allocation8], %s928_s15  ;;  %s183_s6 = scalar_lea.vmem (!%p1050_p13), [#allocation7], %s517_s18 }
  0x54   : > { %722 = dma.done.wait (%p1051_p5), %s180_s4, 128  }
  0x55   : > { %724 = vsyncadd (%p1051_p5), %s180_s4, 4294967168  ;;  %s518_s5 = sshll.u32 %s928_s15, 1  ;;  %s189_s29 = scalar_lea.sflag [#allocation11], %s928_s15 }
  0x56   : > { %s938_s16 = scalar_lea.vmem [#allocation10], %s518_s5 }
  0x57   : > { %726 = dma.done.wait (%p1051_p5), %s189_s29, 32  }
  0x58   : > { %728 = vsyncadd (%p1051_p5), %s189_s29, 4294967264  ;;  %vm224_vm0 = vcmask 3072   ;;  %v759_v0 = vmov 0.0   ;;  %vm235_vm1 = vcmask 1043456   ;;  %v230_v1 = vld [vmem:[%s183_s6] sm:$0xff]  ;;  %v290_v33 = vlaneseq  ;;  %s760_s21 = smov 3  }
  0x59   : > { %228 = vst.msk [vmem:[#allocation5] sm:$0xf] %vm224_vm0, %v759_v0  ;;  %225 = vst.msk [vmem:[#allocation2] sm:$0xf] %vm224_vm0, %v759_v0  ;;  %v233_v2 = vcombine.high %v230_v1, %v230_v1  ;;  %v236_v3 = vsel %vm235_vm1, %v230_v1, -inf  ;;  %s761_s19 = smov 1  }
  0x5a   : > { %226 = vst.msk [vmem:[#allocation3] sm:$0xf] %vm224_vm0, %v759_v0  ;;  %227 = vst.msk [vmem:[#allocation4] sm:$0xf] %vm224_vm0, %v759_v0  ;;  %v237_v4 = vrot.slane %v236_v3, 4  ;;  %v291_v37 = vshrl.u32 %v290_v33, 7 }
  0x5b   : > { %229 = vst.msk [vmem:[#allocation6] sm:$0xf] %vm224_vm0, %v759_v0  ;;  %v243_v5 = vsel %vm235_vm1, %v233_v2, -inf  ;;  %v231_v39 = vld [vmem:[%s938_s16] sm:$0x3]  ;;  %s519_s30 = sshll.u32 %s928_s15, 2 }
  0x5c   : > { %v238_v6 = vmax.f32 %v236_v3, %v237_v4  ;;  %v244_v7 = vrot.slane %v243_v5, 4  ;;  %v294_v38 = vsub.s32 0, %v291_v37  ;;  %v298_v40 = vsub.s32 1, %v291_v37  ;;  %s762_s20 = smov 2   ;;  %s763_s26 = smov 4  }
  0x5d   : > { %s217_s27 = scalar_lea.vmem [#allocation12], %s519_s30  ;;  %vm362_vm4 = vcmask 11272   ;;  %vm369_vm5 = vcmask 19472   ;;  %s521_s28 = sshll.u32 %s747_s12, 6  ;;  %vm376_vm6 = vcmask 27672   ;;  %vm383_vm7 = vcmask 35872  }
  0x5e   : > { %v239_v8 = vrot.slane %v238_v6, 2  ;;  %v245_v9 = vmax.f32 %v243_v5, %v244_v7  ;;  %v295_v41 = vrot.slane %v231_v39, %v294_v38  ;;  %v299_v43 = vrot.slane %v231_v39, %v298_v40  ;;  %s399_s25 = sshll.u32 %s217_s27, 4  ;;  %s988_s8 = scalar_lea.hbm %s1039_s2, %s521_s28  ;;  %s990_s25 = int_to_ptr.vmem [resolvable:$true] %s399_s25 }
  0x5f   : > { %s386_s12 = scalar_lea.sflag [#allocation9], %s928_s15  ;;  %s669_s18 = scalar_lea.vmem %s990_s25, 64 }
  0x60   : > { %v240_v10 = vmax.f32 %v238_v6, %v239_v8  ;;  %v246_v11 = vrot.slane %v245_v9, 2  ;;  %vm300_vm2 = vcmp.eq.s32.totalorder %v291_v37, %v295_v41  ;;  %vm301_vm3 = vcmp.eq.s32.totalorder %v291_v37, %v299_v43  ;;  %p670_p8 = scmp.ne.s32.totalorder %s990_s25, %s669_s18  ;;  %p1052_p0 = scmp.ne.s32.totalorder %s1044_s22, 0 }
  0x61   : > { %v325_v55 = vsel %vm300_vm2, 1.0, %v759_v0  ;;  %v326_v58 = vsel %vm301_vm3, 1.0, %v759_v0  ;;  %s764_s4 = smov [#allocation12]  }
  0x62   : > { %v241_v12 = vrot.slane %v240_v10, 1  ;;  %v247_v13 = vmax.f32 %v245_v9, %v246_v11  ;;  %v327_v3 = vsel %vm235_vm1, %v325_v55, 0.0  ;;  %v328_v4 = vsel %vm235_vm1, %v326_v58, 0.0  ;;  %p671_p7 = pnand %p670_p8, %p1052_p0  ;;  %s673_s6 = sshll.u32 %s764_s4, 4  ;;  %s674_s6 = int_to_ptr.vmem [resolvable:$false] %s673_s6 }
  0x63   : > { %v329_v8 = vadd.f32 %v328_v4, %v327_v3  ;;  %s675_s5 = scalar_lea.vmem %s674_s6, 128  ;;  %p676_p10 = scmp.lt.s32.totalorder %s990_s25, %s674_s6 }
  0x64   : > { %v242_v14 = vmax.f32 %v240_v10, %v241_v12  ;;  %v248_v15 = vrot.slane %v247_v13, 1  ;;  %v334_v12 = vld [vmem:[#allocation5] sm:$0xf]  ;;  %p672_p4 = pneg %p671_p7  ;;  %p677_p12 = scmp.lt.s32.totalorder %s675_s5, %s669_s18 }
  0x66   : > { %v249_v16 = vmax.f32 %v247_v13, %v248_v15  ;;  %p678_p1 = por %p677_p12, %p676_p10 }
  0x68   : > { %v252_v17 = vcombine.low %v242_v14, %v249_v16  ;;  %v316_v14 = vld [vmem:[#allocation3] sm:$0xf]  ;;  %p679_p2 = pnand %p678_p1, %p672_p4 }
  0x6a   : > { %v254_v18 = vsub.f32 %v230_v1, %v252_v17  ;;  %v344_v17 = vld [vmem:[#allocation6] sm:$0xf] }
  0x6c   : > { %v255_v19 = vmul.f32 1.442695, %v254_v18  ;;  %v286_v45 = vcombine.high %v254_v18, %v254_v18 }
  0x6e   : > { %599 = vpow2.f32 %v255_v19  ;;  %v324_v19 = vld [vmem:[#allocation4] sm:$0xf] }
  0x78   : > { %v600_v20 = vpop.eup %599 }
  0x79   : > { %v258_v21 = vcombine.high %v600_v20, %v600_v20  ;;  %v260_v22 = vsel %vm235_vm1, %v600_v20, 0.0 }
  0x7a   : > { %v261_v23 = vrot.slane %v260_v22, 4 }
  0x7b   : > { %v267_v24 = vsel %vm235_vm1, %v258_v21, 0.0 }
  0x7c   : > { %v262_v25 = vadd.f32 %v261_v23, %v260_v22  ;;  %v268_v26 = vrot.slane %v267_v24, 4 }
  0x7e   : > { %v263_v27 = vrot.slane %v262_v25, 2  ;;  %v269_v28 = vadd.f32 %v268_v26, %v267_v24  ;;  %v302_v24 = vld [vmem:[#allocation2] sm:$0xf] }
  0x80   : > { %v264_v29 = vadd.f32 %v263_v27, %v262_v25  ;;  %v270_v30 = vrot.slane %v269_v28, 2 }
  0x82   : > { %v265_v31 = vrot.slane %v264_v29, 1  ;;  %v271_v32 = vadd.f32 %v270_v30, %v269_v28 }
  0x84   : > { %v266_v34 = vadd.f32 %v265_v31, %v264_v29  ;;  %v272_v35 = vrot.slane %v271_v32, 1 }
  0x86   : > { %v273_v36 = vadd.f32 %v272_v35, %v271_v32  ;;  %601 = vrcp.f32 %v266_v34 }
  0x87   : > { %603 = vlog2.f32 %v266_v34 }
  0x88   : > { %605 = vlog2.f32 %v273_v36 }
  0x89   : > { %607 = vrcp.f32 %v273_v36 }
  0x90   : > { %v602_v42 = vpop.eup %601 }
  0x91   : > { %v604_v44 = vpop.eup %603 }
  0x92   : > { %v606_v46 = vpop.eup %605  ;;  %v277_v47 = vmul.f32 0.6931472, %v604_v44 }
  0x93   : > { %v608_v48 = vpop.eup %607  ;;  %v279_v49 = vmul.f32 0.6931472, %v606_v46 }
  0x94   : > { %v288_v50 = vsub.f32 %v277_v47, %v254_v18  ;;  %v282_v51 = vcombine.low %v602_v42, %v608_v48 }
  0x95   : > { %v289_v52 = vsub.f32 %v279_v49, %v286_v45 }
  0x96   : > { %v335_v53 = vsel %vm300_vm2, %v288_v50, 0.0  ;;  %v284_v54 = vmul.f32 %v600_v20, %v282_v51  ;;  %v345_v59 = vsel %vm235_vm1, %v288_v50, 0.0 }
  0x97   : > { %v336_v56 = vsel %vm301_vm3, %v289_v52, 0.0  ;;  %v337_v57 = vsel %vm235_vm1, %v335_v53, 0.0  ;;  %v346_v63 = vsel %vm235_vm1, %v289_v52, 0.0 }
  0x98   : > { %v338_v60 = vsel %vm235_vm1, %v336_v56, 0.0  ;;  %v304_v61 = vcombine.high %v284_v54, %v284_v54  ;;  %v317_v62 = vsel %vm235_vm1, %v284_v54, 0.0  ;;  %v347_v6 = vadd.f32 %v346_v63, %v345_v59 }
  0x99   : > { %v339_v1 = vadd.f32 %v338_v60, %v337_v57  ;;  %v306_v0 = vsel %vm300_vm2, %v284_v54, 0.0 }
  0x9a   : > { %v318_v2 = vsel %vm235_vm1, %v304_v61, 0.0  ;;  %v307_v7 = vsel %vm301_vm3, %v304_v61, 0.0  ;;  %v308_v9 = vsel %vm235_vm1, %v306_v0, 0.0 }
  0x9b   : > { %340 = vadd.xlane.f32.xlu1 %v339_v1  ;;  %v319_v5 = vadd.f32 %v318_v2, %v317_v62  ;;  %v309_v10 = vsel %vm235_vm1, %v307_v7, 0.0 }
  0x9c   : > { %v310_v11 = vadd.f32 %v309_v10, %v308_v9 }
  0x9d   : > { %320 = vadd.xlane.f32.xlu0 %v319_v5 }
  0x9f   : > { %348 = vadd.xlane.f32.xlu1 %v347_v6 }
  0xa1   : > { %330 = vadd.xlane.f32.xlu0 %v329_v8 }
  0xa5   : > { %311 = vadd.xlane.f32.xlu0 %v310_v11 }
 0x128   : > { %v341_v13 = vpop.xlane.xlu1 %340 }
 0x129   : > { %v342_v15 = vadd.f32 %v341_v13, %v334_v12 }
 0x12a   : > { %v321_v16 = vpop.xlane.xlu0 %320 }
 0x12b   : > { %343 = vst.msk [vmem:[#allocation5] sm:$0xf] %vm224_vm0, %v342_v15  ;;  %v322_v18 = vadd.f32 %v321_v16, %v316_v14 }
 0x12c   : > { %v349_v20 = vpop.xlane.xlu1 %348 }
 0x12d   : > { %323 = vst.msk [vmem:[#allocation3] sm:$0xf] %vm224_vm0, %v322_v18  ;;  %v350_v21 = vadd.f32 %v349_v20, %v344_v17 }
 0x12e   : > { %v331_v22 = vpop.xlane.xlu0 %330 }
 0x12f   : > { %v332_v23 = vadd.f32 %v331_v22, %v324_v19  ;;  %351 = vst.msk [vmem:[#allocation6] sm:$0xf] %vm224_vm0, %v350_v21 }
 0x131   : > { %333 = vst.msk [vmem:[#allocation4] sm:$0xf] %vm224_vm0, %v332_v23 }
 0x132   : > { %v371_v25 = vld [vmem:[#allocation5] sm:$0xf]  ;;  %v312_v26 = vpop.xlane.xlu0 %311 }
 0x133   : > { %373 = vrot.lane.b32.xlu1 %v371_v25, %s760_s21  ;;  %v313_v27 = vadd.f32 %v312_v26, %v302_v24 }
 0x134   : > { %v357_v28 = vld [vmem:[#allocation3] sm:$0xf] }
 0x135   : > { %315 = vst.msk [vmem:[#allocation2] sm:$0xf] %vm224_vm0, %v313_v27 }
 0x136   : > { %v378_v30 = vld [vmem:[#allocation6] sm:$0xf] }
 0x137   : > { %359 = vrot.lane.b32.xlu1 %v357_v28, %s761_s19 }
 0x138   : > { %v364_v29 = vld [vmem:[#allocation4] sm:$0xf] }
 0x139   : > { %366 = vrot.lane.b32.xlu0 %v364_v29, %s762_s20 }
 0x13b   : > { %380 = vrot.lane.b32.xlu1 %v378_v30, %s763_s26 }
 0x13c   : > { %v355_v31 = vld [vmem:[#allocation2] sm:$0xf] }
 0x13d   : > { %356 = vst.msk [vmem:[%s217_s27] sm:$0xf] %vm224_vm0, %v355_v31 }
 0x1a5   : > { %v374_v32 = vpop.permute.xlu1 %373 }
 0x1a9   : > { %v360_v33 = vpop.permute.xlu1 %359 }
 0x1aa   : > { %363 = vst.msk [vmem:[%s217_s27] sm:$0xf] %vm362_vm4, %v360_v33 }
 0x1ab   : > { %v367_v34 = vpop.permute.xlu0 %366 }
 0x1ac   : > { %370 = vst.msk [vmem:[%s217_s27] sm:$0xf] %vm369_vm5, %v367_v34 }
 0x1ad   : > { %v381_v35 = vpop.permute.xlu1 %380  ;;  %377 = vst.msk [vmem:[%s217_s27] sm:$0xf] %vm376_vm6, %v374_v32 }
 0x1ae   : > { %384 = vst.msk [vmem:[%s217_s27] sm:$0xf] %vm383_vm7, %v381_v35 }
 0x1af   : > { %682 = shalt.err (!%p679_p2)
}
 0x1b0   : > { %s683_s15 = scalar_lea.hbm %s988_s8, 64  ;;  %s687_s21 = scalar_lea.hbm %s1039_s2, 128 }
 0x1b1   : > { %p684_p9 = scmp.ne.s32.totalorder %s988_s8, %s683_s15  ;;  %p688_p6 = scmp.lt.u32.totalorder %s988_s8, %s1039_s2 }
 0x1b2   : > { %p689_p13 = scmp.lt.u32.totalorder %s687_s21, %s683_s15  ;;  %p691_p8 = scmp.lt.u32.totalorder %s683_s15, %s988_s8 }
 0x1b3   : > { %p685_p11 = pnand %p684_p9, %p1052_p0 }
 0x1b4   : > { %p690_p5 = por %p689_p13, %p688_p6 }
 0x1b5   : > { %p686_p3 = pneg %p685_p11 }
 0x1b6   : > { %p692_p7 = por %p691_p8, %p690_p5 }
 0x1b8   : > { %p693_p4 = pnand %p692_p7, %p686_p3 }
 0x1ba   : > { %696 = shalt.err (!%p693_p4)
}
 0x1bb   : > { %530 = dma.vmem_to_hbm [thread:$0]  (%p1052_p0), %s990_s25, 64, %s988_s8, %s386_s12  }
 0x1bc PF: > { %s411_s20 = sand.u32 1, %s735_s9   ;;  %p1053_p10 = scmp.ne.s32.totalorder %s1045_s24, 0 }
 0x1bd   : > { %p1054_p12 = scmp.ge.s32.totalorder %s755_s14, 2  ;;  %s412_s26 = scalar_lea.sflag [#allocation9], %s411_s20 }
 0x1bf   : > { %p540_p1 = pnand %p1054_p12, %p1053_p10 }
 0x1c1   : > { %730 = dma.done.wait (!%p540_p1), %s412_s26, 64  }
 0x1c2   : > { %732 = vsyncadd (!%p540_p1), %s412_s26, 4294967232  ;;  %s21_s14 = sadd.s32 1, %s755_s14   ;;  %s1055_s9 = smov %s739_s10 }
 0x1c3   : > { %p18_p2 = scmp.ge.s32.totalorder %s21_s14, 4   ;;  %s1056_s10 = smov %s743_s11 }
 0x1c4   : > { %s1057_s11 = smov %s836_s23  ;;  %s1058_s12 = smov %s751_s13 }
 0x1c5   : > { %s1059_s13 = smov %s1061_s17  ;;  %20 = sbr.rel (!%p18_p2) target bundleno = 8 (0x8), region = 94 }
 0x1cc   :  { %417 = vsyncpa [#allocation8], 1 }
 0x1cd   :  { %419 = vsyncpa [#allocation8 + $0x1], 1 }
 0x1ce   :  { %420 = vsyncpa [#allocation11], 1 }
 0x1cf   :  { %422 = vsyncpa [#allocation11 + $0x1], 1 }
 0x1d0   :  { %423 = vsyncpa [#allocation9], 1 }
 0x1d1   :  { %425 = vsyncpa [#allocation9 + $0x1], 1 }

</bundles_post_ra>
